<compile_context>
chip_gen: v7x
topology: tpu7x:2x2x1
jax: 0.10.0
libtpu: 0.0.40
codegen_flags: <defaults>
</compile_context>

<pallas_src>
import functools

import jax
import jax.numpy as jnp
from jax.experimental import pallas as pl
from jax.experimental.pallas import tpu as pltpu


# ---------------------------------------------------------------------------
# In-kernel helpers
# ---------------------------------------------------------------------------
def _pow(base, gamma):
    """base ** gamma with gamma a static Python float (VPU/EUP-friendly)."""
    g = float(gamma)
    if g == 0.0:
        return jnp.ones_like(base)
    if g == 1.0:
        return base
    if g > 0.0 and g == int(g) and g <= 8.0:
        out = base
        for _ in range(int(g) - 1):
            out = out * base
        return out
    # General (non-integer / negative) exponent: clamp to avoid log(0) -> NaN.
    safe = jnp.maximum(base, jnp.float32(1e-30))
    return jnp.exp(jnp.float32(g) * jnp.log(safe))


def _row_stats(x, tgt, c):
    """Per-row scalars of the softmax: m, logZ, sum(x), x[tgt] — all (TB,1)."""
    m = jnp.max(x, axis=-1, keepdims=True)                        # (TB,1)
    z = jnp.sum(jnp.exp(x - m), axis=-1, keepdims=True)           # (TB,1)
    logz = jnp.log(z)
    sx = jnp.sum(x, axis=-1, keepdims=True)                       # (TB,1)
    col = jax.lax.broadcasted_iota(jnp.int32, (1, c), 1)          # (1,C), broadcast
    xt = jnp.sum(jnp.where(col == tgt, x, 0.0), axis=-1, keepdims=True)
    return m, logz, sx, xt, col


def _finish_tile(out_ref, loss_row, tile_base, total_rows):
    """Mask invalid (padded) rows, reduce the tile, write lane-dense block."""
    tb = loss_row.shape[0]
    row = jax.lax.broadcasted_iota(jnp.int32, (tb, 1), 0) + tile_base
    loss_row = jnp.where(row < total_rows, loss_row, 0.0)         # (TB,1) select only
    s11 = jnp.sum(loss_row, axis=0, keepdims=True)                # (1,1)
    out_ref[...] = jnp.broadcast_to(
        s11.reshape(1, 1, 1), out_ref.shape).astype(out_ref.dtype)


# ---------------------------------------------------------------------------
# Kernels
# ---------------------------------------------------------------------------
def _base_kernel(x_ref, tgt_ref, out_ref, *, smoothing, total_rows):
    i = pl.program_id(0)
    x = x_ref[...].astype(jnp.float32)                            # (TB, C)
    tb, c = x.shape
    tgt = tgt_ref[...]                                            # (TB, 1) int32

    m, logz, sx, xt, _ = _row_stats(x, tgt, c)
    conf = 1.0 - smoothing
    # loss_row = conf*(m+logZ - x[tgt]) + s*(m+logZ - sum(x)/C)
    loss_row = (m + logz) - conf * xt - (smoothing / c) * sx
    _finish_tile(out_ref, loss_row, i * tb, total_rows)


def _focal_new_kernel(x_ref, tgt_ref, boost_ref, out_ref, *,
                      smoothing, alpha, gamma, total_rows):
    i = pl.program_id(0)
    x = x_ref[...].astype(jnp.float32)                            # (TB, C)
    tb, c = x.shape
    tgt = tgt_ref[...]                                            # (TB, 1)

    m, logz, sx, xt, col = _row_stats(x, tgt, c)
    mz = m + logz
    conf = 1.0 - smoothing

    b = boost_ref[...].astype(jnp.float32)                        # (TB, Cb) tiny
    cb = b.shape[-1]
    nb_old = cb - 1
    col_b = jax.lax.broadcasted_iota(jnp.int32, (1, cb), 1)
    bm = jnp.max(b, axis=-1, keepdims=True)
    be = jnp.exp(b - bm)
    bz = jnp.sum(be, axis=-1, keepdims=True)
    # pt = softmax(boost)[:, -1] via masked gather (no unaligned lane slice)
    pt = jnp.sum(jnp.where(col_b == nb_old, be, 0.0), axis=-1, keepdims=True) / bz
    fa = jnp.float32(alpha) * _pow(1.0 - pt, gamma)               # (TB,1) scalar/row

    # nll = -f[tgt] * logprobs[tgt]
    nll = -jnp.where(tgt >= nb_old, fa, 1.0) * (xt - mz)

    # smooth = -mean(f * logprobs) = -(sum_lp + (fa-1)*tail_lp)/C
    sum_lp = sx - jnp.float32(c) * mz
    n_new = max(c - nb_old, 0)
    if n_new > 0:
        tail_x = jnp.sum(jnp.where(col >= nb_old, x, 0.0), axis=-1, keepdims=True)
        tail_lp = tail_x - jnp.float32(n_new) * mz
    else:
        tail_lp = jnp.zeros_like(mz)
    smooth = -(sum_lp + (fa - 1.0) * tail_lp) / jnp.float32(c)

    loss_row = conf * nll + smoothing * smooth
    _finish_tile(out_ref, loss_row, i * tb, total_rows)


def _focal_old_kernel(x_ref, tgt_ref, boost_ref, out_ref, *,
                      smoothing, alpha, gamma, total_rows):
    i = pl.program_id(0)
    x = x_ref[...].astype(jnp.float32)                            # (TB, C)
    tb, c = x.shape
    tgt = tgt_ref[...]                                            # (TB, 1)

    m, logz, sx, xt, _ = _row_stats(x, tgt, c)
    mz = m + logz
    conf = 1.0 - smoothing

    b = boost_ref[...].astype(jnp.float32)                        # (TB, Cb) tiny
    cb = b.shape[-1]
    nb_old = cb - 1
    col_b = jax.lax.broadcasted_iota(jnp.int32, (1, cb), 1)
    bm = jnp.max(b, axis=-1, keepdims=True)
    be = jnp.exp(b - bm)
    bsm = be / jnp.sum(be, axis=-1, keepdims=True)                # (TB, Cb)

    # f at the target column (1 when tgt >= nb_old); gather on tiny Cb width.
    pt_t = jnp.sum(jnp.where(col_b == tgt, bsm, 0.0), axis=-1, keepdims=True)
    f_t = jnp.where(tgt < nb_old,
                    jnp.float32(alpha) * _pow(1.0 - pt_t, gamma), 1.0)
    nll = -f_t * (xt - mz)

    # smooth = -(sum_lp + sum_{j<nb_old}(f_j-1)*logprobs_j)/C.
    # Per-column delta is built on the FULL Cb-wide boost tile with a
    # col < nb_old mask (no bsm[:, :n_old] slice); it is contracted against a
    # tiny (TB,Cb) head slice of the logits (Cb << C).
    sum_lp = sx - jnp.float32(c) * mz
    if nb_old > 0 and cb <= c:
        delta = jnp.where(col_b < nb_old,
                          jnp.float32(alpha) * _pow(1.0 - bsm, gamma) - 1.0,
                          0.0)                                    # (TB, Cb)
        x_head = x if cb == c else x[:, :cb]                      # (TB, Cb) tiny
        corr = jnp.sum(delta * (x_head - mz), axis=-1, keepdims=True)
    else:
        corr = jnp.zeros_like(mz)
    smooth = -(sum_lp + corr) / jnp.float32(c)

    loss_row = conf * nll + smoothing * smooth
    _finish_tile(out_ref, loss_row, i * tb, total_rows)


# ---------------------------------------------------------------------------
# Tile-size / VMEM heuristic (bytes-per-step target + explicit scoped limit)
# ---------------------------------------------------------------------------
def _choose_tile(batch, n_classes, n_boost, x_itemsize, b_itemsize):
    per_row_in = n_classes * x_itemsize + 4 + n_boost * b_itemsize   # one buffer
    per_row_tmp = 2 * n_classes * 4          # ~2 live full-width f32 temporaries
    # (a) VMEM: 2x-buffered inputs + temporaries under ~12 MiB (fits v5e's
    #     16 MiB scoped default, half of v6e/v7x's 32 MiB).
    tb_vmem = (12 << 20) // max(2 * per_row_in + per_row_tmp, 1)
    # (b) bytes-moved target: ~4 MiB of logits per grid step (>=85% of HBM
    #     roofline per measured Pallas data, amortizes 0.35 us/step overhead).
    tb_bytes = (4 << 20) // max(n_classes * x_itemsize, 1)
    tb = max(min(tb_vmem, tb_bytes), 8)
    tb = min(tb, batch)
    if batch >= 16:
        tb = min(tb, (batch + 1) // 2)       # >=2 grid steps: v7x megacore work
    if batch >= 8:
        tb = max(8, (tb // 8) * 8)           # sublane-aligned tiles
    else:
        tb = batch                           # single full-array block
    tb = int(tb)
    est = 2 * tb * per_row_in + tb * per_row_tmp + 2 * 8 * 128 * 4
    vmem_limit = int(min(max(2 * est, 16 << 20), 64 << 20))
    return tb, vmem_limit


# ---------------------------------------------------------------------------
# Module wrapper
# ---------------------------------------------------------------------------
class LabelSmoothingCrossEntropyBoosting:
    """NLL loss with label smoothing (+ optional focal boosting), Pallas TPU kernel."""

    def __init__(self, smoothing=0.1, alpha=1, gamma=1, cast_inputs_to_bf16=False):
        assert smoothing < 1.0
        self.smoothing = float(smoothing)
        self.confidence = 1.0 - float(smoothing)
        self.alpha = float(alpha)
        self.gamma = float(gamma)
        # Opt-in: halve HBM DMA bytes on bandwidth-bound v5e/v6e; in-kernel
        # accumulation stays f32, only input precision changes.
        self.cast_inputs_to_bf16 = bool(cast_inputs_to_bf16)

    def __call__(self, x, target, boosting_output=None, boosting_focal=None):
        if self.cast_inputs_to_bf16:
            x = x.astype(jnp.bfloat16)
            if boosting_output is not None:
                boosting_output = boosting_output.astype(jnp.bfloat16)

        B, C = x.shape
        tgt = target.astype(jnp.int32).reshape(B, 1)
        Cb = 0 if boosting_output is None else int(boosting_output.shape[1])
        x_itemsize = jnp.dtype(x.dtype).itemsize
        b_itemsize = (4 if boosting_output is None
                      else jnp.dtype(boosting_output.dtype).itemsize)

        tb, vmem_limit = _choose_tile(B, C, Cb, x_itemsize, b_itemsize)
        g = pl.cdiv(B, tb)
        grid = (g,)

        x_spec = pl.BlockSpec((tb, C), lambda i: (i, 0))
        t_spec = pl.BlockSpec((tb, 1), lambda i: (i, 0))
        # Lane-dense, (8,128)-aligned per-tile partial-sum output (unmasked vst).
        out_spec = pl.BlockSpec((1, 8, 128), lambda i: (i, 0, 0))
        out_shape = jax.ShapeDtypeStruct((g, 8, 128), jnp.float32)

        cparams = pltpu.CompilerParams(
            dimension_semantics=("parallel",),
            vmem_limit_bytes=vmem_limit,
        )
        cost = pl.CostEstimate(
            flops=int(8 * B * C + 12 * B * max(Cb, 1)),
            transcendentals=int(B * C + B * max(Cb, 1)),
            bytes_accessed=int(B * C * x_itemsize + 4 * B
                               + B * Cb * b_itemsize + g * 8 * 128 * 4),
        )

        if boosting_output is None:
            kernel = functools.partial(
                _base_kernel, smoothing=self.smoothing, total_rows=B)
            partial_sums = pl.pallas_call(
                kernel,
                grid=grid,
                out_shape=out_shape,
                in_specs=[x_spec, t_spec],
                out_specs=out_spec,
                compiler_params=cparams,
                cost_estimate=cost,
            )(x, tgt)
        else:
            assert boosting_focal in ("old", "new"), boosting_focal
            b_spec = pl.BlockSpec((tb, Cb), lambda i: (i, 0))
            kfn = _focal_old_kernel if boosting_focal == "old" else _focal_new_kernel
            kernel = functools.partial(
                kfn, smoothing=self.smoothing, alpha=self.alpha,
                gamma=self.gamma, total_rows=B)
            partial_sums = pl.pallas_call(
                kernel,
                grid=grid,
                out_shape=out_shape,
                in_specs=[x_spec, t_spec, b_spec],
                out_specs=out_spec,
                compiler_params=cparams,
                cost_estimate=cost,
            )(x, tgt, boosting_output)

        # Each tile wrote its partial loss sum broadcast across (8,128);
        # pick one lane per tile and finish the batch mean (tiny XLA op).
        return jnp.sum(partial_sums[:, 0, 0]) / jnp.float32(B)


# ---------------------------------------------------------------------------
# Pure-JAX reference (mirrors the PyTorch forward) for verification
# ---------------------------------------------------------------------------
def _reference(x, target, smoothing, alpha, gamma,
               boosting_output=None, boosting_focal=None):
    logprobs = jax.nn.log_softmax(x.astype(jnp.float32), axis=-1)
    if boosting_output is not None:
        bsm = jax.nn.softmax(boosting_output.astype(jnp.float32), axis=-1)
        nb_old = boosting_output.shape[1] - 1
        f = jnp.ones_like(logprobs)
        if boosting_focal == "old":
            pt = bsm[..., :-1]
            f = f.at[:, :nb_old].set(alpha * (1.0 - pt) ** gamma)
        elif boosting_focal == "new":
            pt = bsm[..., -1]
            f = f.at[:, nb_old:].set(alpha * (1.0 - pt[:, None]) ** gamma)
        else:
            raise AssertionError(boosting_focal)
        logprobs = f * logprobs
    nll = -jnp.take_along_axis(
        logprobs, target[:, None].astype(jnp.int32), axis=-1)[:, 0]
    smooth = -jnp.mean(logprobs, axis=-1)
    loss = (1.0 - smoothing) * nll + smoothing * smooth
    return jnp.mean(loss)


if __name__ == "__main__":
    key = jax.random.PRNGKey(0)
    k1, k2, k3, k4, k5, k6 = jax.random.split(key, 6)

    def _check(out, ref, atol=1e-4, rtol=1e-4):
        out = jax.block_until_ready(out)
        ref = jax.block_until_ready(ref)
        assert jnp.allclose(out, ref, atol=atol, rtol=rtol), (out, ref)

    # --- aligned shapes (single tile) ---------------------------------------
    B, C, Cb = 8, 16, 9   # Cb = nb_old_classes + 1
    x = jax.random.normal(k1, (B, C), jnp.float32)
    target = jax.random.randint(k2, (B,), 0, C, jnp.int32)
    boost = jax.random.normal(k3, (B, Cb), jnp.float32)

    loss_mod = LabelSmoothingCrossEntropyBoosting(smoothing=0.1, alpha=1, gamma=1)
    _check(loss_mod(x, target), _reference(x, target, 0.1, 1.0, 1.0))
    _check(loss_mod(x, target, boost, "old"),
           _reference(x, target, 0.1, 1.0, 1.0, boost, "old"))
    _check(loss_mod(x, target, boost, "new"),
           _reference(x, target, 0.1, 1.0, 1.0, boost, "new"))

    # --- different (alpha, gamma): integer fast-pow path --------------------
    loss_mod2 = LabelSmoothingCrossEntropyBoosting(smoothing=0.2, alpha=0.25, gamma=2)
    _check(loss_mod2(x, target, boost, "old"),
           _reference(x, target, 0.2, 0.25, 2.0, boost, "old"))
    _check(loss_mod2(x, target, boost, "new"),
           _reference(x, target, 0.2, 0.25, 2.0, boost, "new"))

    # --- ragged batch: B % tile != 0 exercises multi-tile grid + masking ----
    B2, C2, Cb2 = 13, 24, 5
    x2 = jax.random.normal(k4, (B2, C2), jnp.float32)
    t2 = jax.random.randint(k5, (B2,), 0, C2, jnp.int32)
    b2 = jax.random.normal(k6, (B2, Cb2), jnp.float32)
    _check(loss_mod(x2, t2), _reference(x2, t2, 0.1, 1.0, 1.0))
    _check(loss_mod(x2, t2, b2, "old"),
           _reference(x2, t2, 0.1, 1.0, 1.0, b2, "old"))
    _check(loss_mod(x2, t2, b2, "new"),
           _reference(x2, t2, 0.1, 1.0, 1.0, b2, "new"))

    # --- opt-in bf16 input path (looser tolerance: input precision changes) -
    loss_bf16 = LabelSmoothingCrossEntropyBoosting(
        smoothing=0.1, alpha=1, gamma=1, cast_inputs_to_bf16=True)
    _check(loss_bf16(x, target), _reference(x, target, 0.1, 1.0, 1.0),
           atol=5e-2, rtol=5e-2)

    print("KERNEL_OK")
</pallas_src>

<mosaic_0001>
module attributes {stable_mosaic.version = 11 : i64} {
  func.func @_base_kernel(%arg0: i32, %arg1: memref<8x16xf32, #tpu.memory_space<vmem>>, %arg2: memref<8x1xi32, #tpu.memory_space<vmem>>, %arg3: memref<1x8x128xf32, #tpu.memory_space<vmem>>) attributes {dimension_semantics = [#tpu.dimension_semantics<parallel>], iteration_bounds = array<i64: 1>, scalar_prefetch = 0 : i64, scratch_operands = 0 : i64, tpu.core_type = #tpu.core_type<tc>, window_params = [{transform_indices = @transform_0, window_bounds = array<i64: 8, 16>}, {transform_indices = @transform_1, window_bounds = array<i64: 8, 1>}, {transform_indices = @transform_2, window_bounds = array<i64: 1, 8, 128>}]} {
    %c0 = arith.constant 0 : index
    %c0_0 = arith.constant 0 : index
    %0 = vector.load %arg1[%c0, %c0_0] : memref<8x16xf32, #tpu.memory_space<vmem>>, vector<8x16xf32>
    %c0_1 = arith.constant 0 : index
    %c0_2 = arith.constant 0 : index
    %1 = vector.load %arg2[%c0_1, %c0_2] : memref<8x1xi32, #tpu.memory_space<vmem>>, vector<8x1xi32>
    %cst = arith.constant dense<0xFF800000> : vector<8xf32>
    %2 = vector.multi_reduction <maximumf>, %0, %cst [1] : vector<8x16xf32> to vector<8xf32>
    %3 = vector.shape_cast %2 : vector<8xf32> to vector<8x1xf32>
    %4 = vector.broadcast %3 : vector<8x1xf32> to vector<8x16xf32>
    %5 = arith.subf %0, %4 : vector<8x16xf32>
    %6 = math.exp %5 : vector<8x16xf32>
    %cst_3 = arith.constant dense<0.000000e+00> : vector<8xf32>
    %7 = vector.multi_reduction <add>, %6, %cst_3 [1] : vector<8x16xf32> to vector<8xf32>
    %8 = vector.shape_cast %7 : vector<8xf32> to vector<8x1xf32>
    %9 = math.log %8 : vector<8x1xf32>
    %cst_4 = arith.constant dense<0.000000e+00> : vector<8xf32>
    %10 = vector.multi_reduction <add>, %0, %cst_4 [1] : vector<8x16xf32> to vector<8xf32>
    %11 = vector.shape_cast %10 : vector<8xf32> to vector<8x1xf32>
    %12 = tpu.iota {dimensions = array<i32: 1>} : vector<1x16xi32>
    %13 = vector.broadcast %12 : vector<1x16xi32> to vector<8x16xi32>
    %14 = vector.broadcast %1 : vector<8x1xi32> to vector<8x16xi32>
    %15 = arith.cmpi eq, %13, %14 : vector<8x16xi32>
    %cst_5 = arith.constant 0.000000e+00 : f32
    %16 = vector.broadcast %cst_5 : f32 to vector<8x16xf32>
    %17 = arith.select %15, %0, %16 : vector<8x16xi1>, vector<8x16xf32>
    %cst_6 = arith.constant dense<0.000000e+00> : vector<8xf32>
    %18 = vector.multi_reduction <add>, %17, %cst_6 [1] : vector<8x16xf32> to vector<8xf32>
    %19 = vector.shape_cast %18 : vector<8xf32> to vector<8x1xf32>
    %20 = arith.addf %3, %9 : vector<8x1xf32>
    %cst_7 = arith.constant 0.899999976 : f32
    %21 = vector.broadcast %cst_7 : f32 to vector<8x1xf32>
    %22 = arith.mulf %21, %19 : vector<8x1xf32>
    %23 = arith.subf %20, %22 : vector<8x1xf32>
    %cst_8 = arith.constant 6.250000e-03 : f32
    %24 = vector.broadcast %cst_8 : f32 to vector<8x1xf32>
    %25 = arith.mulf %24, %11 : vector<8x1xf32>
    %26 = arith.subf %23, %25 : vector<8x1xf32>
    %c8_i32 = arith.constant 8 : i32
    %27 = arith.muli %arg0, %c8_i32 : i32
    %28 = tpu.iota {dimensions = array<i32: 0>} : vector<8x1xi32>
    %29 = vector.broadcast %27 : i32 to vector<8x1xi32>
    %30 = arith.addi %28, %29 : vector<8x1xi32>
    %c8_i32_9 = arith.constant 8 : i32
    %31 = vector.broadcast %c8_i32_9 : i32 to vector<8x1xi32>
    %32 = arith.cmpi slt, %30, %31 : vector<8x1xi32>
    %cst_10 = arith.constant 0.000000e+00 : f32
    %33 = vector.broadcast %cst_10 : f32 to vector<8x1xf32>
    %34 = arith.select %32, %26, %33 : vector<8x1xi1>, vector<8x1xf32>
    %cst_11 = arith.constant dense<0.000000e+00> : vector<1xf32>
    %35 = vector.multi_reduction <add>, %34, %cst_11 [0] : vector<8x1xf32> to vector<1xf32>
    %36 = vector.shape_cast %35 : vector<1xf32> to vector<1x1xf32>
    %37 = vector.shape_cast %36 : vector<1x1xf32> to vector<1x1x1xf32>
    %38 = vector.shape_cast %37 : vector<1x1x1xf32> to vector<1x1x1xf32>
    %39 = vector.broadcast %38 : vector<1x1x1xf32> to vector<1x8x128xf32>
    %c0_12 = arith.constant 0 : index
    %c0_13 = arith.constant 0 : index
    %c0_14 = arith.constant 0 : index
    %40 = vector.load %arg3[%c0_12, %c0_13, %c0_14] : memref<1x8x128xf32, #tpu.memory_space<vmem>>, vector<1x8x128xf32>
    tpu.vector_store %arg3[%c0_12, %c0_13, %c0_14], %39 {strides = array<i32>} : memref<1x8x128xf32, #tpu.memory_space<vmem>>, vector<1x8x128xf32>,
    return
  }
  func.func @transform_0(%arg0: i32) -> (i32, i32) {
    %c0_i32 = arith.constant 0 : i32
    %c0_i32_0 = arith.constant 0 : i32
    return %arg0, %c0_i32 : i32, i32
  }
  func.func @transform_1(%arg0: i32) -> (i32, i32) {
    %c0_i32 = arith.constant 0 : i32
    %c0_i32_0 = arith.constant 0 : i32
    return %arg0, %c0_i32 : i32, i32
  }
  func.func @transform_2(%arg0: i32) -> (i32, i32, i32) {
    %c0_i32 = arith.constant 0 : i32
    %c0_i32_0 = arith.constant 0 : i32
    %c0_i32_1 = arith.constant 0 : i32
    return %arg0, %c0_i32, %c0_i32_0 : i32, i32, i32
  }
}

</mosaic_0001>

<bundles_post_ra>
// kernel: tpu_custom_call.1
= control target key start
LH: loop header
LB: loop body
LE: loop exit
PB: predicated region body
PF: predicated region fallthrough
CT: control target
= control target key end

     0   :  { %vm14_vm0 = vcmask 130048   ;;  %s142_s0 = inlined_call_operand.vmem [shape: f32[8,16], index: 0, kind: input, shape index: {}]   ;;  %s143_s1 = inlined_call_operand.vmem [shape: s32[8,1], index: 1, kind: input, shape index: {}]   ;;  %s144_s2 = inlined_call_operand.hbm [shape: f32[1,8,128], index: 2, kind: output, shape index: {}]  }
   0x1   :  { %v12_v0 = vld [vmem:[%s142_s0] sm:$0xff] }
   0x2   :  { %7 = vsyncpa [#allocation3], 0  ;;  %v15_v1 = vsel %vm14_vm0, %v12_v0, -inf  ;;  %v103_v2 = vmov 0   ;;  %v13_v3 = vld [vmem:[%s143_s1] sm:$0xff]  ;;  %v29_v7 = vlaneseq  ;;  %v26_v14 = vsel %vm14_vm0, %v12_v0, 0.0 }
   0x3   :  { %74 = vset.pattern.permute.xlu0 %v103_v2  ;;  %s104_s0 = smov [#allocation2]  }
   0x4   :  { %16 = vmax.xlane.f32.xlu0 %v15_v1  ;;  %v30_v8 = vand.u32 127, %v29_v7  ;;  %s64_s1 = sshll.u32 %s104_s0, 4  ;;  %s65_s1 = int_to_ptr.vmem [resolvable:$true] %s64_s1 }
   0x5   :  { %s79_s13 = scalar_lea.vmem %s65_s1, 128  ;;  %p84_p1 = scmp.lt.s32.totalorder %s65_s1, %s65_s1 }
   0x6   :  { %p80_p0 = scmp.ne.s32.totalorder %s65_s1, %s79_s13  ;;  %p85_p2 = scmp.lt.s32.totalorder %s79_s13, %s79_s13 }
   0x8   :  { %p86_p3 = por %p85_p2, %p84_p1 }
   0xa   :  { %p87_p4 = pnand %p86_p3, %p80_p0 }
  0x1a   :  { %32 = vperm.xlu0 %74, %v13_v3  }
  0x91   :  { %v17_v4 = vpop.xlane.xlu0 %16 }
  0x92   :  { %v18_v5 = vsub.f32 %v12_v0, %v17_v4 }
  0x94   :  { %v19_v6 = vmul.f32 1.442695, %v18_v5 }
  0x96   :  { %75 = vpow2.f32 %v19_v6 }
  0x99   :  { %v33_v9 = vpop.permute.xlu0 %32 }
  0x9a   :  { %vm34_vm1 = vcmp.eq.s32.totalorder %v30_v8, %v33_v9 }
  0x9b   :  { %v35_v11 = vsel %vm34_vm1, %v12_v0, 0.0 }
  0x9c   :  { %v36_v13 = vsel %vm14_vm0, %v35_v11, 0.0 }
  0xa0   :  { %v76_v10 = vpop.eup %75 }
  0xa1   :  { %v21_v12 = vsel %vm14_vm0, %v76_v10, 0.0 }
  0xa2   :  { %22 = vadd.xlane.f32.xlu1 %v21_v12 }
  0xa6   :  { %37 = vadd.xlane.f32.xlu1 %v36_v13 }
  0xaa   :  { %27 = vadd.xlane.f32.xlu1 %v26_v14 }
 0x12f   :  { %v23_v15 = vpop.xlane.xlu1 %22 }
 0x130   :  { %77 = vlog2.f32 %v23_v15 }
 0x133   :  { %v38_v16 = vpop.xlane.xlu1 %37 }
 0x134   :  { %v40_v21 = vmul.f32 0.9, %v38_v16 }
 0x137   :  { %v28_v18 = vpop.xlane.xlu1 %27 }
 0x138   :  { %v42_v22 = vmul.f32 0.00625, %v28_v18 }
 0x13a   :  { %v78_v17 = vpop.eup %77 }
 0x13b   :  { %v25_v19 = vmul.f32 0.6931472, %v78_v17 }
 0x13d   :  { %v39_v20 = vadd.f32 %v25_v19, %v17_v4 }
 0x13f   :  { %v41_v23 = vsub.f32 %v39_v20, %v40_v21 }
 0x141   :  { %v43_v24 = vsub.f32 %v41_v23, %v42_v22 }
 0x143   :  { %v51_v25 = vrot.slane %v43_v24, 4 }
 0x145   :  { %v52_v26 = vadd.f32 %v51_v25, %v43_v24 }
 0x147   :  { %v53_v27 = vrot.slane %v52_v26, 2 }
 0x149   :  { %v54_v28 = vadd.f32 %v53_v27, %v52_v26 }
 0x14b   :  { %v55_v29 = vrot.slane %v54_v28, 1 }
 0x14d   :  { %v56_v30 = vadd.f32 %v55_v29, %v54_v28 }
 0x14f   :  { %57 = vst [vmem:[#allocation2] sm:$0xff] %v56_v30 }
 0x150   :  { %90 = shalt.err (!%p87_p4)
}
 0x151   :  { %s91_s16 = scalar_lea.hbm %s144_s2, 128 }
 0x152   :  { %p92_p5 = scmp.ne.s32.totalorder %s144_s2, %s91_s16  ;;  %p95_p6 = scmp.lt.u32.totalorder %s91_s16, %s144_s2 }
 0x154   :  { %p97_p7 = pnand %p95_p6, %p92_p5 }
 0x156   :  { %100 = shalt.err (!%p97_p7)
}
 0x157   :  { %67 = dma.vmem_to_hbm [thread:$0]  %s65_s1, 128, %s144_s2, [#allocation3]  }
 0x158   :  { %101 = dma.done.wait [#allocation3], 128  }
 0x159   :  { %102 = vsyncadd [#allocation3], 4294967168 }
 0x15a   :  { %71 = vsyncpa [#allocation3], 1 }

</bundles_post_ra>
